<compile_context>
chip_gen: v6e
topology: v6e:2x2x1
jax: 0.10.0
libtpu: 0.0.40
codegen_flags: <defaults>
</compile_context>

<pallas_src>
import jax
import jax.numpy as jnp
from jax.experimental import pallas as pl
from jax.experimental.pallas import tpu as pltpu


_LANE = 128                    # vreg lane width
_SUBLANE = 8                   # f32 sublane count
_MAX_TILE_ELEMS = 256 * 1024   # 1 MiB per f32 tile


def _mish_kernel(x_ref, o_ref):
    x = x_ref[...].astype(jnp.float32)
    # tanh(softplus(x)) = u / (u + 2) with u = e^x * (e^x + 2).  The clamp at
    # 20 keeps e^x finite and matches PyTorch's softplus threshold behaviour
    # (for x > 20, u/(u+2) ~= 1 so mish(x) ~= x).
    t = jnp.exp(jnp.minimum(x, 20.0))
    u = t * (t + 2.0)
    y = x * u * pl.reciprocal(u + 2.0, approx=True)
    o_ref[...] = y.astype(o_ref.dtype)


def _choose_layout(n):
    """Pick a lane-dense 2-D layout (rows, cols) and a row-tile size for n elems."""
    cols = 512 if n >= 2 * _SUBLANE * 512 else _LANE
    rows = -(-n // cols)
    rows = -(-rows // _SUBLANE) * _SUBLANE            # sublane multiple
    max_rows = max(_SUBLANE, _MAX_TILE_ELEMS // cols)  # ~1 MiB f32 tile
    if rows > max_rows:
        block_rows = max_rows
        rows = -(-rows // block_rows) * block_rows     # grid divides evenly
    elif rows >= 2 * _SUBLANE and (rows // 2) % _SUBLANE == 0:
        block_rows = rows // 2                         # >=2 steps: both v7x cores
    else:
        block_rows = rows
    return rows, cols, block_rows


def mish(x):
    """Pallas TPU Mish: x * tanh(softplus(x)), same shape/dtype as input."""
    orig_shape = x.shape
    flat = x.reshape(-1)
    n = flat.size
    rows, cols, block_rows = _choose_layout(n)
    n_pad = rows * cols
    if n_pad != n:
        flat = jnp.pad(flat, (0, n_pad - n))
    slab = flat.reshape(rows, cols)

    out = pl.pallas_call(
        _mish_kernel,
        out_shape=jax.ShapeDtypeStruct((rows, cols), x.dtype),
        grid=(rows // block_rows,),
        in_specs=[pl.BlockSpec((block_rows, cols), lambda i: (i, 0))],
        out_specs=pl.BlockSpec((block_rows, cols), lambda i: (i, 0)),
        compiler_params=pltpu.CompilerParams(
            dimension_semantics=("parallel",)),
    )(slab)

    return out.reshape(-1)[:n].reshape(orig_shape)


def _mish_ref(x):
    return x * jnp.tanh(jax.nn.softplus(x))


if __name__ == "__main__":
    key = jax.random.PRNGKey(0)
    fwd = jax.jit(mish)

    # Primary case: small 4-D tensor like the PyTorch module would see.
    x = 3.0 * jax.random.normal(key, (2, 4, 16, 16), jnp.float32)
    y = fwd(x)
    jax.block_until_ready(y)
    assert y.shape == x.shape and y.dtype == x.dtype
    assert bool(jnp.all(jnp.isfinite(y)))
    assert bool(jnp.allclose(y, _mish_ref(x), rtol=1e-2, atol=1e-2)), (
        float(jnp.max(jnp.abs(y - _mish_ref(x)))))

    # Ragged shape (exercises the padding path) and a larger multi-tile shape.
    for shape in [(3, 5, 7, 11), (8, 4, 32, 32)]:
        xi = 3.0 * jax.random.normal(
            jax.random.fold_in(key, shape[0]), shape, jnp.float32)
        yi = jax.block_until_ready(fwd(xi))
        assert yi.shape == xi.shape
        assert bool(jnp.all(jnp.isfinite(yi)))
        assert bool(jnp.allclose(yi, _mish_ref(xi), rtol=1e-2, atol=1e-2))

    print("KERNEL_OK")
</pallas_src>

<mosaic_0001>
module attributes {stable_mosaic.version = 11 : i64} {
  func.func @_mish_kernel(%arg0: i32, %arg1: memref<8x128xf32, #tpu.memory_space<vmem>>, %arg2: memref<8x128xf32, #tpu.memory_space<vmem>>) attributes {dimension_semantics = [#tpu.dimension_semantics<parallel>], iteration_bounds = array<i64: 2>, scalar_prefetch = 0 : i64, scratch_operands = 0 : i64, tpu.core_type = #tpu.core_type<tc>, window_params = [{transform_indices = @transform_0, window_bounds = array<i64: 8, 128>}, {transform_indices = @transform_1, window_bounds = array<i64: 8, 128>}]} {
    %c0 = arith.constant 0 : index
    %c0_0 = arith.constant 0 : index
    %0 = vector.load %arg1[%c0, %c0_0] : memref<8x128xf32, #tpu.memory_space<vmem>>, vector<8x128xf32>
    %cst = arith.constant 2.000000e+01 : f32
    %1 = vector.broadcast %cst : f32 to vector<8x128xf32>
    %2 = arith.minimumf %0, %1 : vector<8x128xf32>
    %3 = math.exp %2 : vector<8x128xf32>
    %cst_1 = arith.constant 2.000000e+00 : f32
    %4 = vector.broadcast %cst_1 : f32 to vector<8x128xf32>
    %5 = arith.addf %3, %4 : vector<8x128xf32>
    %6 = arith.mulf %3, %5 : vector<8x128xf32>
    %7 = arith.mulf %0, %6 : vector<8x128xf32>
    %cst_2 = arith.constant 2.000000e+00 : f32
    %8 = vector.broadcast %cst_2 : f32 to vector<8x128xf32>
    %9 = arith.addf %6, %8 : vector<8x128xf32>
    %10 = tpu.reciprocal %9 {approx = true} : vector<8x128xf32> -> vector<8x128xf32>
    %11 = arith.mulf %7, %10 : vector<8x128xf32>
    %c0_3 = arith.constant 0 : index
    %c0_4 = arith.constant 0 : index
    %12 = vector.load %arg2[%c0_3, %c0_4] : memref<8x128xf32, #tpu.memory_space<vmem>>, vector<8x128xf32>
    tpu.vector_store %arg2[%c0_3, %c0_4], %11 {strides = array<i32>} : memref<8x128xf32, #tpu.memory_space<vmem>>, vector<8x128xf32>,
    return
  }
  func.func @transform_0(%arg0: i32) -> (i32, i32) {
    %c0_i32 = arith.constant 0 : i32
    %c0_i32_0 = arith.constant 0 : i32
    return %arg0, %c0_i32 : i32, i32
  }
  func.func @transform_1(%arg0: i32) -> (i32, i32) {
    %c0_i32 = arith.constant 0 : i32
    %c0_i32_0 = arith.constant 0 : i32
    return %arg0, %c0_i32 : i32, i32
  }
}

</mosaic_0001>

<bundles_post_ra>
// kernel: mish.1
= control target key start
LH: loop header
LB: loop body
LE: loop exit
PB: predicated region body
PF: predicated region fallthrough
CT: control target
= control target key end

     0   :  { %s215_s6 = smov 0   ;;  %s226_s0 = inlined_call_operand.vmem [shape: f32[16,128], index: 0, kind: input, shape index: {}]   ;;  %s227_s1 = inlined_call_operand.vmem [shape: f32[16,128], index: 1, kind: output, shape index: {}]  }
   0x1 LB: > { %s176_s7 = sadd.s32 4294967295, %s203_s6   ;;  %p180_p0 = scmp.ge.s32.totalorder %s203_s6, 1  ;;  %s203_s6 = sphi %s215_s6, %s11_s6  }
   0x2   : > { %p86_p1 = scmp.lt.s32.totalorder %s203_s6, 3 }
   0x4   : > { %p87_p2 = pnand %p180_p0, %p86_p1 }
   0x5   : > { %p104_p3 = scmp.lt.s32.totalorder (!%p87_p2), %s176_s7, 1 }
   0x6   : > { %90 = sbr.rel (%p87_p2) target bundleno = 56 (0x38), region = 24 }
   0xb   : > { %s229_s7 = smov (!%p104_p3, %s176_s7), 1 }
   0xc   : > { %s181_s8 = sshll.u32 %s229_s7, 3 }
   0xd   : > { %s107_s11 = scalar_lea.vmem %s226_s0, %s181_s8  ;;  %s111_s14 = scalar_lea.vmem %s227_s1, %s181_s8 }
   0xe   : > { %v112_v0 = vld [vmem:[%s107_s11] sm:$0xff] }
   0xf   : > { %v113_v1 = vmin.f32 %v112_v0, 20.0 }
  0x11   : > { %v114_v2 = vmul.f32 1.442695, %v113_v1 }
  0x13   : > { %193 = vpow2.f32 %v114_v2 }
  0x20   : > { %v194_v3 = vpop.eup %193 }
  0x21   : > { %v116_v4 = vadd.f32 2.0, %v194_v3 }
  0x23   : > { %v117_v5 = vmul.f32 %v194_v3, %v116_v4 }
  0x25   : > { %v119_v6 = vadd.f32 2.0, %v117_v5  ;;  %v118_v7 = vmul.f32 %v117_v5, %v112_v0 }
  0x27   : > { %195 = vrcp.f32 %v119_v6 }
  0x34   : > { %v196_v8 = vpop.eup %195 }
  0x35   : > { %v121_v9 = vmul.f32 %v196_v8, %v118_v7 }
  0x37   : > { %122 = vst [vmem:[%s111_s14] sm:$0xff] %v121_v9 }
  0x38 PF: > { %s11_s6 = sadd.s32 1, %s203_s6  }
  0x39   : > { %p8_p4 = scmp.ge.s32.totalorder %s11_s6, 4  }
  0x3b   :  { %10 = sbr.rel (!%p8_p4) target bundleno = 1 (0x1), region = 54 }

</bundles_post_ra>
